<compile_context>
chip_gen: v7x
topology: tpu7x:2x2x1
jax: 0.10.0
libtpu: 0.0.40
codegen_flags: <defaults>
</compile_context>

<pallas_src>
import jax
import jax.numpy as jnp
from jax.experimental import pallas as pl
from jax.experimental.pallas import tpu as pltpu

_LANE = 128
_SUBLANE = 8


def _loss_kernel(w_ref, pred_ref, targ_ref, out_ref):
    # Grid = (core, tile). The inner "arbitrary" axis streams tiles; the
    # output block (indexed only by core) stays resident and accumulates.
    i = pl.program_id(1)

    @pl.when(i == 0)
    def _():
        out_ref[...] = jnp.zeros_like(out_ref)

    p = pred_ref[...]        # (tr, 128) f32
    t = targ_ref[...]        # (tr, 128) f32

    diff = p - t
    sq = diff * diff

    wd = w_ref[0]
    wl = w_ref[1]
    wm = w_ref[2]
    wh = w_ref[3]
    whst = w_ref[4]

    # Weight lookup via m = min(t, 10 - t):
    #   m==1 -> {1,9} highest ; m==2 -> {2,8} high ; m==3 -> {3,7} mid
    #   m==4 -> {4,6}: t==4 -> mid else low ; m==5 -> {5} low ; else default.
    # Exactly equivalent to the original nested equality lookup (including
    # non-integer, out-of-range and NaN targets -> default).
    m = jnp.minimum(t, 10.0 - t)
    w = jnp.where(
        m == 1.0, whst,
        jnp.where(
            m == 2.0, wh,
            jnp.where(
                m == 3.0, wm,
                jnp.where(
                    m == 4.0, jnp.where(t == 4.0, wm, wl),
                    jnp.where(m == 5.0, wl, wd)))))

    # Fold the (tr, 128) tile to one (8, 128) vreg partial per quantity, then
    # accumulate into the resident output block (2 vld + 2 vst per step).
    tr = sq.shape[0]
    sq_part = jnp.sum(sq.reshape(tr // _SUBLANE, _SUBLANE, _LANE), axis=0)
    w_part = jnp.sum(w.reshape(tr // _SUBLANE, _SUBLANE, _LANE), axis=0)
    out_ref[0, 0] += sq_part
    out_ref[0, 1] += w_part


def custom_weighted_loss(predictions, targets,
                         weight_default, weight_low, weight_mid,
                         weight_high, weight_highest,
                         tile_rows=4096, num_cores=2):
    pred = predictions.reshape(-1).astype(jnp.float32)
    targ = targets.reshape(-1).astype(jnp.float32)   # keep f32: exact semantics
    n = int(pred.shape[0])

    # Lane-dense (rows, 128) slab, streamed in (tr, 128) tiles.
    rows = pl.cdiv(n, _LANE)
    rows8 = pl.cdiv(rows, _SUBLANE) * _SUBLANE
    tile_rows = max(_SUBLANE, (int(tile_rows) // _SUBLANE) * _SUBLANE)
    tr = min(tile_rows, rows8)

    n_tiles = pl.cdiv(rows, tr)
    num_cores = max(1, min(int(num_cores), n_tiles))   # avoid all-padding tiles
    n_tiles = pl.cdiv(n_tiles, num_cores) * num_cores  # even split across cores
    grid_inner = n_tiles // num_cores
    rows_total = n_tiles * tr
    pad = rows_total * _LANE - n

    if pad:
        # Only taken when n is not already a multiple of the slab size.
        # Zero padding contributes 0 to sq_err and pad*weight_default to the
        # weight sum, which is corrected analytically below.
        pred = jnp.pad(pred, (0, pad))
        targ = jnp.pad(targ, (0, pad))
    pred2 = pred.reshape(rows_total, _LANE)
    targ2 = targ.reshape(rows_total, _LANE)

    weights_vec = jnp.stack([
        jnp.asarray(weight_default, jnp.float32),
        jnp.asarray(weight_low, jnp.float32),
        jnp.asarray(weight_mid, jnp.float32),
        jnp.asarray(weight_high, jnp.float32),
        jnp.asarray(weight_highest, jnp.float32)])

    partials = pl.pallas_call(
        _loss_kernel,
        out_shape=jax.ShapeDtypeStruct((num_cores, 2, _SUBLANE, _LANE),
                                       jnp.float32),
        grid_spec=pltpu.PrefetchScalarGridSpec(
            num_scalar_prefetch=0,
            grid=(num_cores, grid_inner),
            in_specs=[
                # Weight parameters: tiny runtime SMEM operand (no recompile
                # when the module's weights change).
                pl.BlockSpec(memory_space=pltpu.MemorySpace.SMEM),
                pl.BlockSpec((tr, _LANE),
                             lambda c, i: (c * grid_inner + i, 0)),
                pl.BlockSpec((tr, _LANE),
                             lambda c, i: (c * grid_inner + i, 0)),
            ],
            # One resident (1, 2, 8, 128) accumulator block per core.
            out_specs=pl.BlockSpec((1, 2, _SUBLANE, _LANE),
                                   lambda c, i: (c, 0, 0, 0)),
        ),
        compiler_params=pltpu.CompilerParams(
            dimension_semantics=("parallel", "arbitrary")),
    )(weights_vec, pred2, targ2)

    # Final scalar math in the wrapper (tiny): combine per-core partials and
    # remove the padding's weight_default contribution analytically.
    sse = jnp.sum(partials[:, 0])
    sum_w = jnp.sum(partials[:, 1]) - jnp.float32(pad) * weights_vec[0]
    inv_n = jnp.float32(1.0 / n)
    return (sse * inv_n) * (sum_w * inv_n)


def _reference_loss(predictions, targets, wd, wl, wm, wh, whst):
    p = predictions.astype(jnp.float32)
    t = targets.astype(jnp.float32)
    mse = jnp.mean((p - t) ** 2)
    weights = jnp.where(
        (t == 1) | (t == 9), whst,
        jnp.where(
            (t == 2) | (t == 8), wh,
            jnp.where(
                (t == 3) | (t == 4) | (t == 7), wm,
                jnp.where((t == 5) | (t == 6), wl, wd))))
    return jnp.mean(mse * weights)


if __name__ == "__main__":
    # The five scalar "parameters" of the module.
    weight_default = 1.0
    weight_low = 1.5
    weight_mid = 2.0
    weight_high = 3.0
    weight_highest = 5.0

    key = jax.random.PRNGKey(0)
    k_pred, k_targ = jax.random.split(key)

    # Small NCHW example, consistent with a dense-prediction loss.
    shape = (2, 4, 16, 16)
    predictions = jax.random.normal(k_pred, shape, dtype=jnp.float32)
    # Integer class targets 0..9 (so the == comparisons are meaningful).
    targets = jax.random.randint(k_targ, shape, 0, 10).astype(jnp.float32)

    loss = custom_weighted_loss(predictions, targets,
                                weight_default, weight_low, weight_mid,
                                weight_high, weight_highest)
    loss = jax.block_until_ready(loss)

    ref = _reference_loss(predictions, targets,
                          weight_default, weight_low, weight_mid,
                          weight_high, weight_highest)
    ref = jax.block_until_ready(ref)

    assert jnp.allclose(loss, ref, rtol=1e-5, atol=1e-6), (loss, ref)
    print("KERNEL_OK")
</pallas_src>

<mosaic_0001>
module attributes {stable_mosaic.version = 11 : i64} {
  func.func @_loss_kernel(%arg0: i32, %arg1: i32, %arg2: memref<5xf32, #tpu.memory_space<smem>>, %arg3: memref<16x128xf32, #tpu.memory_space<vmem>>, %arg4: memref<16x128xf32, #tpu.memory_space<vmem>>, %arg5: memref<1x2x8x128xf32, #tpu.memory_space<vmem>>) attributes {dimension_semantics = [#tpu.dimension_semantics<parallel>, #tpu.dimension_semantics<arbitrary>], iteration_bounds = array<i64: 1, 1>, scalar_prefetch = 0 : i64, scratch_operands = 0 : i64, tpu.core_type = #tpu.core_type<tc>, window_params = [{transform_indices = @transform_0, window_bounds = array<i64: 5>}, {transform_indices = @transform_1, window_bounds = array<i64: 16, 128>}, {transform_indices = @transform_2, window_bounds = array<i64: 16, 128>}, {transform_indices = @transform_3, window_bounds = array<i64: 1, 2, 8, 128>}]} {
    %c0_i32 = arith.constant 0 : i32
    %0 = arith.cmpi eq, %arg1, %c0_i32 : i32
    %1 = arith.extui %0 : i1 to i32
    %c0_i32_0 = arith.constant 0 : i32
    %2 = arith.cmpi ne, %1, %c0_i32_0 : i32
    scf.if %2 {
      %cst_29 = arith.constant 0.000000e+00 : f32
      %56 = vector.broadcast %cst_29 : f32 to vector<1x2x8x128xf32>
      %c0_30 = arith.constant 0 : index
      %c0_31 = arith.constant 0 : index
      %c0_32 = arith.constant 0 : index
      %c0_33 = arith.constant 0 : index
      %57 = vector.load %arg5[%c0_30, %c0_31, %c0_32, %c0_33] : memref<1x2x8x128xf32, #tpu.memory_space<vmem>>, vector<1x2x8x128xf32>
      tpu.vector_store %arg5[%c0_30, %c0_31, %c0_32, %c0_33], %56 {strides = array<i32>} : memref<1x2x8x128xf32, #tpu.memory_space<vmem>>, vector<1x2x8x128xf32>,
    } else {
    }
    %c0 = arith.constant 0 : index
    %c0_1 = arith.constant 0 : index
    %3 = vector.load %arg3[%c0, %c0_1] : memref<16x128xf32, #tpu.memory_space<vmem>>, vector<16x128xf32>
    %c0_2 = arith.constant 0 : index
    %c0_3 = arith.constant 0 : index
    %4 = vector.load %arg4[%c0_2, %c0_3] : memref<16x128xf32, #tpu.memory_space<vmem>>, vector<16x128xf32>
    %5 = arith.subf %3, %4 : vector<16x128xf32>
    %6 = arith.mulf %5, %5 : vector<16x128xf32>
    %c0_4 = arith.constant 0 : index
    %7 = memref.load %arg2[%c0_4] : memref<5xf32, #tpu.memory_space<smem>>
    %c1 = arith.constant 1 : index
    %8 = memref.load %arg2[%c1] : memref<5xf32, #tpu.memory_space<smem>>
    %c2 = arith.constant 2 : index
    %9 = memref.load %arg2[%c2] : memref<5xf32, #tpu.memory_space<smem>>
    %c3 = arith.constant 3 : index
    %10 = memref.load %arg2[%c3] : memref<5xf32, #tpu.memory_space<smem>>
    %c4 = arith.constant 4 : index
    %11 = memref.load %arg2[%c4] : memref<5xf32, #tpu.memory_space<smem>>
    %cst = arith.constant 1.000000e+01 : f32
    %12 = vector.broadcast %cst : f32 to vector<16x128xf32>
    %13 = arith.subf %12, %4 : vector<16x128xf32>
    %14 = arith.minimumf %4, %13 : vector<16x128xf32>
    %cst_5 = arith.constant 1.000000e+00 : f32
    %15 = vector.broadcast %cst_5 : f32 to vector<16x128xf32>
    %16 = arith.cmpf oeq, %14, %15 : vector<16x128xf32>
    %cst_6 = arith.constant 2.000000e+00 : f32
    %17 = vector.broadcast %cst_6 : f32 to vector<16x128xf32>
    %18 = arith.cmpf oeq, %14, %17 : vector<16x128xf32>
    %cst_7 = arith.constant 3.000000e+00 : f32
    %19 = vector.broadcast %cst_7 : f32 to vector<16x128xf32>
    %20 = arith.cmpf oeq, %14, %19 : vector<16x128xf32>
    %cst_8 = arith.constant 4.000000e+00 : f32
    %21 = vector.broadcast %cst_8 : f32 to vector<16x128xf32>
    %22 = arith.cmpf oeq, %14, %21 : vector<16x128xf32>
    %cst_9 = arith.constant 4.000000e+00 : f32
    %23 = vector.broadcast %cst_9 : f32 to vector<16x128xf32>
    %24 = arith.cmpf oeq, %4, %23 : vector<16x128xf32>
    %25 = vector.broadcast %9 : f32 to vector<16x128xf32>
    %26 = vector.broadcast %8 : f32 to vector<16x128xf32>
    %27 = arith.select %24, %25, %26 : vector<16x128xi1>, vector<16x128xf32>
    %cst_10 = arith.constant 5.000000e+00 : f32
    %28 = vector.broadcast %cst_10 : f32 to vector<16x128xf32>
    %29 = arith.cmpf oeq, %14, %28 : vector<16x128xf32>
    %30 = vector.broadcast %8 : f32 to vector<16x128xf32>
    %31 = vector.broadcast %7 : f32 to vector<16x128xf32>
    %32 = arith.select %29, %30, %31 : vector<16x128xi1>, vector<16x128xf32>
    %33 = arith.select %22, %27, %32 : vector<16x128xi1>, vector<16x128xf32>
    %34 = vector.broadcast %9 : f32 to vector<16x128xf32>
    %35 = arith.select %20, %34, %33 : vector<16x128xi1>, vector<16x128xf32>
    %36 = vector.broadcast %10 : f32 to vector<16x128xf32>
    %37 = arith.select %18, %36, %35 : vector<16x128xi1>, vector<16x128xf32>
    %38 = vector.broadcast %11 : f32 to vector<16x128xf32>
    %39 = arith.select %16, %38, %37 : vector<16x128xi1>, vector<16x128xf32>
    %40 = vector.shape_cast %6 : vector<16x128xf32> to vector<2x8x128xf32>
    %cst_11 = arith.constant dense<0.000000e+00> : vector<8x128xf32>
    %41 = vector.multi_reduction <add>, %40, %cst_11 [0] : vector<2x8x128xf32> to vector<8x128xf32>
    %42 = vector.shape_cast %39 : vector<16x128xf32> to vector<2x8x128xf32>
    %cst_12 = arith.constant dense<0.000000e+00> : vector<8x128xf32>
    %43 = vector.multi_reduction <add>, %42, %cst_12 [0] : vector<2x8x128xf32> to vector<8x128xf32>
    %c0_13 = arith.constant 0 : index
    %c0_14 = arith.constant 0 : index
    %c0_15 = arith.constant 0 : index
    %c0_16 = arith.constant 0 : index
    %44 = vector.load %arg5[%c0_13, %c0_14, %c0_15, %c0_16] : memref<1x2x8x128xf32, #tpu.memory_space<vmem>>, vector<1x1x8x128xf32>
    %45 = vector.shape_cast %44 : vector<1x1x8x128xf32> to vector<8x128xf32>
    %46 = arith.addf %45, %41 : vector<8x128xf32>
    %c0_17 = arith.constant 0 : index
    %c0_18 = arith.constant 0 : index
    %c0_19 = arith.constant 0 : index
    %c0_20 = arith.constant 0 : index
    %47 = vector.load %arg5[%c0_17, %c0_18, %c0_19, %c0_20] : memref<1x2x8x128xf32, #tpu.memory_space<vmem>>, vector<1x1x8x128xf32>
    %48 = vector.shape_cast %47 : vector<1x1x8x128xf32> to vector<8x128xf32>
    %49 = vector.shape_cast %46 : vector<8x128xf32> to vector<1x1x8x128xf32>
    tpu.vector_store %arg5[%c0_17, %c0_18, %c0_19, %c0_20], %49 {strides = array<i32>} : memref<1x2x8x128xf32, #tpu.memory_space<vmem>>, vector<1x1x8x128xf32>,
    %c0_21 = arith.constant 0 : index
    %c1_22 = arith.constant 1 : index
    %c0_23 = arith.constant 0 : index
    %c0_24 = arith.constant 0 : index
    %50 = vector.load %arg5[%c0_21, %c1_22, %c0_23, %c0_24] : memref<1x2x8x128xf32, #tpu.memory_space<vmem>>, vector<1x1x8x128xf32>
    %51 = vector.shape_cast %50 : vector<1x1x8x128xf32> to vector<8x128xf32>
    %52 = arith.addf %51, %43 : vector<8x128xf32>
    %c0_25 = arith.constant 0 : index
    %c1_26 = arith.constant 1 : index
    %c0_27 = arith.constant 0 : index
    %c0_28 = arith.constant 0 : index
    %53 = vector.load %arg5[%c0_25, %c1_26, %c0_27, %c0_28] : memref<1x2x8x128xf32, #tpu.memory_space<vmem>>, vector<1x1x8x128xf32>
    %54 = vector.shape_cast %53 : vector<1x1x8x128xf32> to vector<8x128xf32>
    %55 = vector.shape_cast %52 : vector<8x128xf32> to vector<1x1x8x128xf32>
    tpu.vector_store %arg5[%c0_25, %c1_26, %c0_27, %c0_28], %55 {strides = array<i32>} : memref<1x2x8x128xf32, #tpu.memory_space<vmem>>, vector<1x1x8x128xf32>,
    return
  }
  func.func @transform_0(%arg0: i32, %arg1: i32) -> i32 {
    %c0_i32 = arith.constant 0 : i32
    %c0_i32_0 = arith.constant 0 : i32
    return %c0_i32 : i32
  }
  func.func @transform_1(%arg0: i32, %arg1: i32) -> (i32, i32) {
    %c1_i32 = arith.constant 1 : i32
    %0 = arith.muli %arg0, %c1_i32 : i32
    %1 = arith.addi %0, %arg1 : i32
    %c0_i32 = arith.constant 0 : i32
    %c0_i32_0 = arith.constant 0 : i32
    return %1, %c0_i32 : i32, i32
  }
  func.func @transform_2(%arg0: i32, %arg1: i32) -> (i32, i32) {
    %c1_i32 = arith.constant 1 : i32
    %0 = arith.muli %arg0, %c1_i32 : i32
    %1 = arith.addi %0, %arg1 : i32
    %c0_i32 = arith.constant 0 : i32
    %c0_i32_0 = arith.constant 0 : i32
    return %1, %c0_i32 : i32, i32
  }
  func.func @transform_3(%arg0: i32, %arg1: i32) -> (i32, i32, i32, i32) {
    %c0_i32 = arith.constant 0 : i32
    %c0_i32_0 = arith.constant 0 : i32
    %c0_i32_1 = arith.constant 0 : i32
    %c0_i32_2 = arith.constant 0 : i32
    return %arg0, %c0_i32, %c0_i32_0, %c0_i32_1 : i32, i32, i32, i32
  }
}

</mosaic_0001>

<bundles_post_ra>
// kernel: tpu_custom_call.1
= control target key start
LH: loop header
LB: loop body
LE: loop exit
PB: predicated region body
PF: predicated region fallthrough
CT: control target
= control target key end

     0   :  { %8 = vsyncpa [#allocation5], 0  ;;  %s340_s0 = inlined_call_operand.hbm [shape: f32[5], index: 0, kind: input, shape index: {}]   ;;  %s341_s1 = inlined_call_operand.hbm [shape: f32[16,128], index: 1, kind: input, shape index: {}]   ;;  %s342_s2 = inlined_call_operand.hbm [shape: f32[16,128], index: 2, kind: input, shape index: {}]   ;;  %s343_s3 = inlined_call_operand.hbm [shape: f32[1,2,8,128], index: 3, kind: output, shape index: {}]  }
   0x1   :  { %9 = vsyncpa [#allocation3], 0 }
   0x2   :  { %10 = vsyncpa [#allocation8], 0 }
   0x3   :  { %11 = vsyncpa [#allocation4], 0  ;;  %s157_s14 = scalar_lea.hbm %s340_s0, 16 }
   0x4   :  { %p158_p0 = scmp.ne.s32.totalorder %s340_s0, %s157_s14  ;;  %p161_p1 = scmp.lt.u32.totalorder %s157_s14, %s340_s0 }
   0x6   :  { %p163_p2 = pnand %p161_p1, %p158_p0 }
   0x8   :  { %166 = shalt.err (!%p163_p2)
}
   0x9   :  { %s241_s19 = smov [#allocation2]   ;;  %s242_s22 = smov [#allocation6]  }
   0xa   :  { %19 = dma.hbm_to_smem %s340_s0, 16, %s241_s19, [#allocation5]  }
   0xb   :  { %s29_s23 = sshll.u32 %s242_s22, 4  ;;  %s167_s26 = scalar_lea.hbm %s341_s1, 256  ;;  %s30_s23 = int_to_ptr.vmem [resolvable:$true] %s29_s23 }
   0xc   :  { %p168_p3 = scmp.ne.s32.totalorder %s341_s1, %s167_s26  ;;  %p171_p4 = scmp.lt.u32.totalorder %s167_s26, %s341_s1 }
   0xe   :  { %p173_p5 = pnand %p171_p4, %p168_p3 }
  0x10   :  { %176 = shalt.err (!%p173_p5)
}
  0x11   :  { %s177_s4 = scalar_lea.vmem %s30_s23, 256  ;;  %p182_p7 = scmp.lt.s32.totalorder %s30_s23, %s30_s23 }
  0x12   :  { %p178_p6 = scmp.ne.s32.totalorder %s30_s23, %s177_s4  ;;  %p183_p8 = scmp.lt.s32.totalorder %s177_s4, %s177_s4 }
  0x14   :  { %p184_p9 = por %p183_p8, %p182_p7 }
  0x16   :  { %p185_p10 = pnand %p184_p9, %p178_p6 }
  0x18   :  { %188 = shalt.err (!%p185_p10)
}
  0x19   :  { %s243_s0 = smov 128   ;;  %s244_s5 = smov 8  }
  0x1a   :  { %35 = dma.hbm_to_vmem [thread:$0]  %s341_s1, 256, %s30_s23, [#allocation3], %s243_s0, %s243_s0, %s244_s5  }
  0x1b   :  { %s245_s8 = smov [#allocation7]   ;;  %s189_s12 = scalar_lea.hbm %s342_s2, 256 }
  0x1c   :  { %s45_s9 = sshll.u32 %s245_s8, 4  ;;  %p190_p11 = scmp.ne.s32.totalorder %s342_s2, %s189_s12  ;;  %s46_s9 = int_to_ptr.vmem [resolvable:$true] %s45_s9 }
  0x1d   :  { %p193_p12 = scmp.lt.u32.totalorder %s189_s12, %s342_s2 }
  0x1f   :  { %p195_p13 = pnand %p193_p12, %p190_p11 }
  0x21   :  { %198 = shalt.err (!%p195_p13)
}
  0x22   :  { %s199_s17 = scalar_lea.vmem %s46_s9, 256  ;;  %p204_p1 = scmp.lt.s32.totalorder %s46_s9, %s46_s9 }
  0x23   :  { %p200_p0 = scmp.ne.s32.totalorder %s46_s9, %s199_s17  ;;  %p205_p2 = scmp.lt.s32.totalorder %s199_s17, %s199_s17 }
  0x25   :  { %p206_p3 = por %p205_p2, %p204_p1 }
  0x27   :  { %p207_p4 = pnand %p206_p3, %p200_p0 }
  0x29   :  { %210 = shalt.err (!%p207_p4)
}
  0x2a   :  { %51 = dma.hbm_to_vmem [thread:$0]  %s342_s2, 256, %s46_s9, [#allocation8], %s243_s0, %s243_s0, %s244_s5  }
  0x2b   :  { %233 = dma.done.wait [#allocation5], 16  }
  0x2c   :  { %234 = vsyncadd [#allocation5], 4294967280 }
  0x2d   :  { %235 = dma.done.wait [#allocation3], 256  }
  0x2e   :  { %236 = vsyncadd [#allocation3], 4294967040 }
  0x2f   :  { %237 = dma.done.wait [#allocation8], 256  }
  0x30   :  { %238 = vsyncadd [#allocation8], 4294967040 }
  0x31   :  { %61 = sfence }
  0x32   :  { %v72_v0 = vld [vmem:[#allocation6] sm:$0xff]  ;;  %v73_v1 = vld [vmem:[#allocation6 + $0x8] sm:$0xff]  ;;  %v74_v2 = vld [vmem:[#allocation7] sm:$0xff]  ;;  %s309_s19 = sld [smem:[#allocation2]]  ;;  %s146_s20 = sld [smem:[#allocation2 + $0x1]] }
  0x33   :  { %v75_v3 = vld [vmem:[#allocation7 + $0x8] sm:$0xff]  ;;  %v76_v4 = vsub.f32 %v72_v0, %v74_v2  ;;  %v85_v5 = vsub.f32 10.0, %v74_v2  ;;  %s147_s21 = sld [smem:[#allocation2 + $0x2]]  ;;  %s311_s2 = sld [smem:[#allocation2 + $0x3]]  ;;  %vm97_vm0 = vcmp.eq.f32.partialorder %v74_v2, 4.0 }
  0x34   :  { %v77_v6 = vsub.f32 %v73_v1, %v75_v3  ;;  %v86_v7 = vsub.f32 10.0, %v75_v3  ;;  %s313_s22 = sld [smem:[#allocation2 + $0x4]]  ;;  %vm98_vm1 = vcmp.eq.f32.partialorder %v75_v3, 4.0  ;;  %s246_s23 = smov [#allocation9]  }
  0x35   :  { %v78_v8 = vmul.f32 %v76_v4, %v76_v4  ;;  %v87_v9 = vmin.f32 %v74_v2, %v85_v5  ;;  %s132_s24 = sshll.u32 %s246_s23, 4  ;;  %s133_s24 = int_to_ptr.vmem [resolvable:$true] %s132_s24 }
  0x36   :  { %v79_v10 = vmul.f32 %v77_v6, %v77_v6  ;;  %v88_v11 = vmin.f32 %v75_v3, %v86_v7  ;;  %s211_s25 = scalar_lea.vmem %s133_s24, 256  ;;  %p216_p6 = scmp.lt.s32.totalorder %s133_s24, %s133_s24 }
  0x37   :  { %vm89_vm2 = vcmp.eq.f32.partialorder %v87_v9, 1.0  ;;  %vm91_vm3 = vcmp.eq.f32.partialorder %v87_v9, 2.0  ;;  %vm93_vm4 = vcmp.eq.f32.partialorder %v87_v9, 3.0  ;;  %vm95_vm7 = vcmp.eq.f32.partialorder %v87_v9, 4.0  ;;  %p212_p5 = scmp.ne.s32.totalorder %s133_s24, %s211_s25  ;;  %p217_p7 = scmp.lt.s32.totalorder %s211_s25, %s211_s25 }
  0x38   :  { %v118_v12 = vadd.f32 %v79_v10, %v78_v8  ;;  %vm92_vm5 = vcmp.eq.f32.partialorder %v88_v11, 2.0  ;;  %vm94_vm6 = vcmp.eq.f32.partialorder %v88_v11, 3.0  ;;  %vm96_vm8 = vcmp.eq.f32.partialorder %v88_v11, 4.0 }
  0x39   :  { %v100_v13 = vstv %s146_s20  ;;  %vm103_vm9 = vcmp.eq.f32.partialorder %v87_v9, 5.0  ;;  %vm104_vm10 = vcmp.eq.f32.partialorder %v88_v11, 5.0  ;;  %v99_v14 = vstv %s147_s21  ;;  %p218_p8 = por %p217_p7, %p216_p6 }
  0x3a   :  { %v105_v15 = vstv %s309_s19  ;;  %v112_v16 = vstv %s311_s2  ;;  %v101_v17 = vsel %vm97_vm0, %v99_v14, %v100_v13  ;;  %v102_v18 = vsel %vm98_vm1, %v99_v14, %v100_v13  ;;  %122 = vst [vmem:[#allocation9] sm:$0xff] %v118_v12 }
  0x3b   :  { %v106_v19 = vsel %vm103_vm9, %v100_v13, %v105_v15  ;;  %v107_v20 = vsel %vm104_vm10, %v100_v13, %v105_v15  ;;  %vm90_vm11 = vcmp.eq.f32.partialorder %v88_v11, 1.0  ;;  %v115_v23 = vstv %s313_s22  ;;  %p219_p9 = pnand %p218_p8, %p212_p5 }
  0x3c   :  { %v108_v21 = vsel %vm95_vm7, %v101_v17, %v106_v19  ;;  %v109_v22 = vsel %vm96_vm8, %v102_v18, %v107_v20 }
  0x3d   :  { %v110_v24 = vsel %vm93_vm4, %v99_v14, %v108_v21  ;;  %v111_v25 = vsel %vm94_vm6, %v99_v14, %v109_v22 }
  0x3e   :  { %v113_v26 = vsel %vm91_vm3, %v112_v16, %v110_v24  ;;  %v114_v27 = vsel %vm92_vm5, %v112_v16, %v111_v25 }
  0x3f   :  { %v116_v28 = vsel %vm89_vm2, %v115_v23, %v113_v26  ;;  %v117_v29 = vsel %vm90_vm11, %v115_v23, %v114_v27 }
  0x40   :  { %v119_v30 = vadd.f32 %v117_v29, %v116_v28 }
  0x42   :  { %126 = vst [vmem:[#allocation9 + $0x8] sm:$0xff] %v119_v30 }
  0x43   :  { %222 = shalt.err (!%p219_p9)
}
  0x44   :  { %s223_s28 = scalar_lea.hbm %s343_s3, 256 }
  0x45   :  { %p224_p10 = scmp.ne.s32.totalorder %s343_s3, %s223_s28  ;;  %p227_p11 = scmp.lt.u32.totalorder %s223_s28, %s343_s3 }
  0x47   :  { %p229_p12 = pnand %p227_p11, %p224_p10 }
  0x49   :  { %232 = shalt.err (!%p229_p12)
}
  0x4a   :  { %138 = dma.vmem_to_hbm [thread:$0]  %s133_s24, 256, %s343_s3, [#allocation4], %s243_s0, %s243_s0, %s244_s5  }
  0x4b   :  { %239 = dma.done.wait [#allocation4], 256  }
  0x4c   :  { %240 = vsyncadd [#allocation4], 4294967040 }
  0x4d   :  { %142 = vsyncpa [#allocation3], 1 }
  0x4e   :  { %143 = vsyncpa [#allocation8], 1 }
  0x4f   :  { %144 = vsyncpa [#allocation4], 1 }
  0x50   :  { %145 = vsyncpa [#allocation5], 1 }

</bundles_post_ra>
